<compile_context>
chip_gen: v5e
topology: v5e:2x2
jax: 0.10.0
libtpu: 0.0.40
codegen_flags: <defaults>
</compile_context>

<pallas_src>
import functools

import jax
import jax.numpy as jnp
from jax.experimental import pallas as pl
from jax.experimental.pallas import tpu as pltpu


# ----------------------------- Pallas kernel -------------------------------

def _shared_mlp_kernel(w_ref, shift_ref, x_ref, o_ref, *,
                       negative_slope, use_activation):
    # w_ref:     (C_out, C_in)  scaled conv weight (BN scale folded), resident
    # shift_ref: (C_out, 1)     per-channel shift (bias + BN terms), resident
    # x_ref:     (1, C_in, T)   input tile: channels on sublanes, pixels on lanes
    # o_ref:     (1, C_out, T)  lane-dense output tile
    z = jnp.dot(w_ref[...], x_ref[0], preferred_element_type=jnp.float32)
    z = z + shift_ref[...]                     # f32 epilogue (v5e-safe)
    if use_activation:
        z = jnp.where(z > 0, z, negative_slope * z)
    o_ref[0] = z.astype(o_ref.dtype)


# ------------------------------- wrapper ------------------------------------

def shared_mlp(x, weight, bias, *,
               bn_gamma=None, bn_beta=None, bn_mean=None, bn_var=None,
               bn_eps=1e-6, use_bn=False, use_activation=True,
               negative_slope=0.2, io_dtype=None,
               vmem_budget_bytes=24 * 1024 * 1024):
    """Pointwise SharedMLP (1x1 conv [+ eval-mode BN] [+ LeakyReLU]).

    Args:
      x:      (B, C_in, N, K) float  -- NCHW, same as the PyTorch module.
      weight: (C_out, C_in)   float  -- Conv2d weight squeezed from (C_out,C_in,1,1).
      bias:   (C_out,)        float
      io_dtype: if set (e.g. jnp.bfloat16), x / weights are cast and the output
                is emitted in that dtype (halves HBM traffic; f32 accumulate).
    Returns:
      (B, C_out, N, K) in io_dtype (or x.dtype if io_dtype is None).
    """
    B, C_in, N, K = x.shape
    C_out = weight.shape[0]
    NK = N * K

    # Fold conv bias + (eval-mode) BN into the weight matrix / a per-channel shift.
    weight = weight.astype(jnp.float32)
    bias = bias.astype(jnp.float32)
    if use_bn:
        inv_std = 1.0 / jnp.sqrt(bn_var.astype(jnp.float32) + bn_eps)
        scale = bn_gamma.astype(jnp.float32) * inv_std                 # (C_out,)
        w_scaled = weight * scale[:, None]                             # (C_out, C_in)
        shift = (bias - bn_mean.astype(jnp.float32)) * scale \
            + bn_beta.astype(jnp.float32)                              # (C_out,)
    else:
        w_scaled = weight
        shift = bias

    out_dtype = io_dtype if io_dtype is not None else x.dtype
    if io_dtype is not None:
        x = x.astype(io_dtype)
        w_scaled = w_scaled.astype(io_dtype)

    # Native NCHW: flatten the spatial dims onto the lane axis (metadata-only).
    x_flat = x.reshape(B, C_in, NK)
    shift2 = shift.reshape(C_out, 1)

    # Tile the pixel axis to fill VMEM: 2x double-buffered (input + output) tiles.
    in_bytes = jnp.dtype(x_flat.dtype).itemsize
    out_bytes = jnp.dtype(out_dtype).itemsize
    per_col_bytes = 2 * (C_in * in_bytes + C_out * out_bytes)
    tile_cap = max(128, (vmem_budget_bytes // per_col_bytes) // 128 * 128)
    tile_cap = min(tile_cap, 32768)
    tile_nk = NK if NK <= tile_cap else tile_cap        # full dim OR multiple of 128
    grid = (B, pl.cdiv(NK, tile_nk))

    cost = pl.CostEstimate(
        flops=2 * B * NK * C_in * C_out,
        transcendentals=0,
        bytes_accessed=(B * NK * (C_in * in_bytes + C_out * out_bytes)
                        + w_scaled.size * jnp.dtype(w_scaled.dtype).itemsize
                        + shift2.size * 4),
    )

    kernel = functools.partial(_shared_mlp_kernel,
                               negative_slope=negative_slope,
                               use_activation=use_activation)

    out_flat = pl.pallas_call(
        kernel,
        out_shape=jax.ShapeDtypeStruct((B, C_out, NK), out_dtype),
        grid_spec=pltpu.PrefetchScalarGridSpec(
            num_scalar_prefetch=0,
            grid=grid,
            in_specs=[
                pl.BlockSpec((C_out, C_in), lambda b, j: (0, 0)),      # weights (resident)
                pl.BlockSpec((C_out, 1), lambda b, j: (0, 0)),         # shift   (resident)
                pl.BlockSpec((1, C_in, tile_nk), lambda b, j: (b, 0, j)),
            ],
            out_specs=pl.BlockSpec((1, C_out, tile_nk), lambda b, j: (b, 0, j)),
        ),
        compiler_params=pltpu.CompilerParams(
            dimension_semantics=("parallel", "parallel"),
            vmem_limit_bytes=48 * 1024 * 1024),
        cost_estimate=cost,
    )(w_scaled, shift2, x_flat)

    return out_flat.reshape(B, C_out, N, K)


# ---------------------------- reference (JAX) --------------------------------

def shared_mlp_ref(x, weight, bias, *, bn_gamma, bn_beta, bn_mean, bn_var,
                   bn_eps=1e-6, use_bn=False, use_activation=True,
                   negative_slope=0.2):
    y = jnp.einsum('bcnk,oc->bonk', x, weight) + bias[None, :, None, None]
    if use_bn:
        inv_std = 1.0 / jnp.sqrt(bn_var + bn_eps)
        y = (y - bn_mean[None, :, None, None]) * (bn_gamma * inv_std)[None, :, None, None] \
            + bn_beta[None, :, None, None]
    if use_activation:
        y = jnp.where(y > 0, y, negative_slope * y)
    return y


# --------------------------------- main --------------------------------------

if __name__ == "__main__":
    key = jax.random.PRNGKey(0)
    B, C_in, C_out, N, K = 2, 4, 32, 16, 8

    k1, k2, k3, k4, k5, k6, k7 = jax.random.split(key, 7)
    x = jax.random.normal(k1, (B, C_in, N, K), dtype=jnp.float32)
    weight = 0.1 * jax.random.normal(k2, (C_out, C_in), dtype=jnp.float32)
    bias = 0.1 * jax.random.normal(k3, (C_out,), dtype=jnp.float32)
    bn_gamma = 1.0 + 0.05 * jax.random.normal(k4, (C_out,), dtype=jnp.float32)
    bn_beta = 0.05 * jax.random.normal(k5, (C_out,), dtype=jnp.float32)
    bn_mean = 0.01 * jax.random.normal(k6, (C_out,), dtype=jnp.float32)
    bn_var = jnp.abs(1.0 + 0.05 * jax.random.normal(k7, (C_out,), dtype=jnp.float32))

    ref = shared_mlp_ref(x, weight, bias,
                         bn_gamma=bn_gamma, bn_beta=bn_beta,
                         bn_mean=bn_mean, bn_var=bn_var,
                         use_bn=True, use_activation=True)

    # f32 path (bit-accurate vs reference).
    out = shared_mlp(x, weight, bias,
                     bn_gamma=bn_gamma, bn_beta=bn_beta,
                     bn_mean=bn_mean, bn_var=bn_var,
                     use_bn=True, use_activation=True)
    out = jax.block_until_ready(out)
    assert out.shape == (B, C_out, N, K)
    assert jnp.allclose(out, ref, atol=1e-5, rtol=1e-5), \
        float(jnp.max(jnp.abs(out - ref)))

    # bf16-I/O path (bandwidth-halving variant for v6e / v7x; f32 accumulate).
    out_bf16 = shared_mlp(x, weight, bias,
                          bn_gamma=bn_gamma, bn_beta=bn_beta,
                          bn_mean=bn_mean, bn_var=bn_var,
                          use_bn=True, use_activation=True,
                          io_dtype=jnp.bfloat16)
    out_bf16 = jax.block_until_ready(out_bf16)
    assert jnp.allclose(out_bf16.astype(jnp.float32), ref, atol=5e-2, rtol=5e-2), \
        float(jnp.max(jnp.abs(out_bf16.astype(jnp.float32) - ref)))

    print("KERNEL_OK")
</pallas_src>

<mosaic_0001>
module attributes {stable_mosaic.version = 11 : i64} {
  func.func @_shared_mlp_kernel(%arg0: i32, %arg1: i32, %arg2: memref<32x4xf32, #tpu.memory_space<vmem>>, %arg3: memref<32x1xf32, #tpu.memory_space<vmem>>, %arg4: memref<1x4x128xf32, #tpu.memory_space<vmem>>, %arg5: memref<1x32x128xf32, #tpu.memory_space<vmem>>) attributes {dimension_semantics = [#tpu.dimension_semantics<parallel>, #tpu.dimension_semantics<parallel>], iteration_bounds = array<i64: 2, 1>, scalar_prefetch = 0 : i64, scratch_operands = 0 : i64, tpu.core_type = #tpu.core_type<tc>, window_params = [{pipeline_mode = #tpu.pipeline_mode<synchronous>, transform_indices = @transform_0, window_bounds = array<i64: 32, 4>}, {pipeline_mode = #tpu.pipeline_mode<synchronous>, transform_indices = @transform_1, window_bounds = array<i64: 32, 1>}, {transform_indices = @transform_2, window_bounds = array<i64: 1, 4, 128>}, {transform_indices = @transform_3, window_bounds = array<i64: 1, 32, 128>}]} {
    %c0 = arith.constant 0 : index
    %c0_0 = arith.constant 0 : index
    %0 = vector.load %arg2[%c0, %c0_0] : memref<32x4xf32, #tpu.memory_space<vmem>>, vector<32x4xf32>
    %c0_1 = arith.constant 0 : index
    %c0_2 = arith.constant 0 : index
    %c0_3 = arith.constant 0 : index
    %1 = vector.load %arg4[%c0_1, %c0_2, %c0_3] : memref<1x4x128xf32, #tpu.memory_space<vmem>>, vector<1x4x128xf32>
    %2 = vector.shape_cast %1 : vector<1x4x128xf32> to vector<4x128xf32>
    %cst = arith.constant dense<0.000000e+00> : vector<32x128xf32>
    %3 = tpu.matmul %0, %2, %cst {dimension_numbers = #tpu.dot_dimension_numbers<[1], [0], [0], [1], [0, 0, 1, 1], [], []>} : vector<32x4xf32>, vector<4x128xf32>, vector<32x128xf32> -> vector<32x128xf32>
    %c0_4 = arith.constant 0 : index
    %c0_5 = arith.constant 0 : index
    %4 = vector.load %arg3[%c0_4, %c0_5] : memref<32x1xf32, #tpu.memory_space<vmem>>, vector<32x1xf32>
    %5 = vector.broadcast %4 : vector<32x1xf32> to vector<32x128xf32>
    %6 = arith.addf %3, %5 : vector<32x128xf32>
    %cst_6 = arith.constant 0.000000e+00 : f32
    %7 = vector.broadcast %cst_6 : f32 to vector<32x128xf32>
    %8 = arith.cmpf ogt, %6, %7 : vector<32x128xf32>
    %cst_7 = arith.constant 2.000000e-01 : f32
    %9 = vector.broadcast %cst_7 : f32 to vector<32x128xf32>
    %10 = arith.mulf %9, %6 : vector<32x128xf32>
    %11 = arith.select %8, %6, %10 : vector<32x128xi1>, vector<32x128xf32>
    %c0_8 = arith.constant 0 : index
    %c0_9 = arith.constant 0 : index
    %c0_10 = arith.constant 0 : index
    %12 = vector.load %arg5[%c0_8, %c0_9, %c0_10] : memref<1x32x128xf32, #tpu.memory_space<vmem>>, vector<1x32x128xf32>
    %13 = vector.shape_cast %12 : vector<1x32x128xf32> to vector<32x128xf32>
    %14 = vector.shape_cast %11 : vector<32x128xf32> to vector<1x32x128xf32>
    tpu.vector_store %arg5[%c0_8, %c0_9, %c0_10], %14 {strides = array<i32>} : memref<1x32x128xf32, #tpu.memory_space<vmem>>, vector<1x32x128xf32>,
    return
  }
  func.func @transform_0(%arg0: i32, %arg1: i32) -> (i32, i32) {
    %c0_i32 = arith.constant 0 : i32
    %c0_i32_0 = arith.constant 0 : i32
    %c0_i32_1 = arith.constant 0 : i32
    return %c0_i32, %c0_i32_0 : i32, i32
  }
  func.func @transform_1(%arg0: i32, %arg1: i32) -> (i32, i32) {
    %c0_i32 = arith.constant 0 : i32
    %c0_i32_0 = arith.constant 0 : i32
    %c0_i32_1 = arith.constant 0 : i32
    return %c0_i32, %c0_i32_0 : i32, i32
  }
  func.func @transform_2(%arg0: i32, %arg1: i32) -> (i32, i32, i32) {
    %c0_i32 = arith.constant 0 : i32
    %c0_i32_0 = arith.constant 0 : i32
    return %arg0, %c0_i32, %arg1 : i32, i32, i32
  }
  func.func @transform_3(%arg0: i32, %arg1: i32) -> (i32, i32, i32) {
    %c0_i32 = arith.constant 0 : i32
    %c0_i32_0 = arith.constant 0 : i32
    return %arg0, %c0_i32, %arg1 : i32, i32, i32
  }
}

</mosaic_0001>

<bundles_post_ra>
// kernel: tpu_custom_call.1
= control target key start
LH: loop header
LB: loop body
LE: loop exit
PB: predicated region body
PF: predicated region fallthrough
CT: control target
= control target key end

     0   :  { %8 = vsyncpa [#allocation3], 0  ;;  %s683_s0 = inlined_call_operand.vmem [shape: f32[32,4], index: 0, kind: input, shape index: {}]   ;;  %s684_s1 = inlined_call_operand.vmem [shape: f32[32,1], index: 1, kind: input, shape index: {}]   ;;  %s685_s2 = inlined_call_operand.vmem [shape: f32[2,4,128], index: 2, kind: input, shape index: {}]   ;;  %s686_s3 = inlined_call_operand.hbm [shape: f32[2,32,128], index: 3, kind: output, shape index: {}]  }
   0x1   :  { %10 = vsyncpa [#allocation3 + $0x1], 0  ;;  %s558_s12 = smov 0   ;;  %s560_s13 = smov 0  }
   0x2   :  { %s562_s14 = smov 0   ;;  %s564_s15 = smov 0  }
   0x3   :  { %s566_s16 = smov 0   ;;  %s568_s17 = smov 0  }
   0x4 LB: > { %s374_s18 = sadd.s32 4294967295, %s533_s17   ;;  %s375_s19 = sadd.s32 4294967294, %s533_s17   ;;  %s533_s17 = sphi %s568_s17, %s16_s17   ;;  %s529_s16 = sphi %s566_s16, %s693_s16   ;;  %s525_s15 = sphi %s564_s15, %s692_s15   ;;  %s521_s14 = sphi %s562_s14, %s691_s14   ;;  %s517_s13 = sphi %s560_s13, %s690_s13   ;;  %s513_s12 = sphi %s558_s12, %s689_s12  }
   0x5   : > { %s28_s20 = sadd.s32 1, %s529_s16  ;;  %s107_s21 = sadd.s32 1, %s521_s14 }
   0x6   : > { %p30_p0 = scmp.ge.s32.totalorder %s28_s20, 2  ;;  %p117_p1 = scmp.ne.s32.totalorder %s521_s14, %s517_s13 }
   0x7   : > { %p118_p2 = scmp.eq.s32.totalorder %s374_s18, 1  ;;  %p123_p3 = scmp.ne.s32.totalorder %s517_s13, %s513_s12 }
   0x8   : > { %s695_s20 = smov (%p30_p0, %s28_s20), 0  ;;  %p124_p5 = scmp.eq.s32.totalorder %s375_s19, 1 }
   0x9   : > { %p598_p4 = por %p118_p2, %p117_p1  ;;  %s102_s23 = ssub.s32 %s529_s16, %s695_s20 }
   0xa   : > { %p378_p6 = scmp.ge.s32.totalorder %s533_s17, 1  ;;  %p105_p7 = scmp.eq.s32.totalorder %s102_s23, 0 }
   0xb   : > { %p605_p8 = por %p124_p5, %p123_p3  ;;  %p158_p9 = scmp.lt.s32.totalorder %s533_s17, 3 }
   0xc   : > { %s611_s25 = scalar_select %p105_p7, %s521_s14, %s107_s21  }
   0xd   : > { %p159_p10 = pnand %p378_p6, %p158_p9 }
   0xe   : > { %p184_p11 = scmp.lt.s32.totalorder (!%p159_p10), %s525_s15, 1  ;;  %s181_s30 = sand.u32 (!%p159_p10), 1, %s517_s13  }
   0xf   : > { %162 = sbr.rel (%p159_p10) target bundleno = 170 (0xaa), region = 32  ;;  %s391_s5 = sshll.u32 (!%p159_p10), %s525_s15, 5 }
  0x10   : > { %s295_s8 = scalar_lea.hbm (!%p159_p10), %s686_s3, %s391_s5  ;;  %s283_s11 = scalar_lea.sflag (!%p159_p10), [#allocation3], %s181_s30 }
  0x11   : > { %s475_s26 = scalar_lea.hbm (!%p159_p10), %s686_s3, 64 }
  0x14   : > { %v535_v0 = vmov 0   ;;  %v198_v1 = vld [vmem:[%s684_s1 + $0x10] sm:$0xff]  ;;  %s185_s28 = scalar_select %p184_p11, %s525_s15, 1  ;;  %v196_v2 = vld [vmem:[%s684_s1] sm:$0xff]  ;;  %vm233_vm0 = vcmask 1043456   ;;  %vm220_vm1 = vcmask 31744  }
  0x15   : > { %454 = vset.pattern.permute.xlu1 %v535_v0  ;;  %453 = vset.pattern.permute.xlu0 %v535_v0  ;;  %v191_v4 = vld [vmem:[%s683_s0] sm:$0xff]  ;;  %v192_v5 = vld [vmem:[%s683_s0 + $0x8] sm:$0xff]  ;;  %v193_v6 = vld [vmem:[%s683_s0 + $0x10] sm:$0xff]  ;;  %s298_s15 = sshll.u32 %s295_s8, 4  ;;  %s299_s15 = int_to_ptr.hbm [resolvable:$true] %s298_s15 }
  0x16   : > { %212 = vperm.xlu1 %454, %v198_v1   ;;  %202 = vperm.xlu0 %453, %v196_v2   ;;  %s380_s4 = sshll.u32 %s185_s28, 2  ;;  %v194_v7 = vld [vmem:[%s683_s0 + $0x18] sm:$0xff]  ;;  %v197_v9 = vld [vmem:[%s684_s1 + $0x8] sm:$0xff]  ;;  %s469_s18 = sshra.s32 %s299_s15, 4  ;;  %s470_s18 = int_to_ptr.hbm [resolvable:$true] %s469_s18 }
  0x17   : > { %s190_s7 = scalar_lea.vmem %s685_s2, %s380_s4  ;;  %v199_v8 = vld [vmem:[%s684_s1 + $0x18] sm:$0xff]  ;;  %s379_s4 = sshll.u32 %s181_s30, 5 }
  0x18   : > { %v195_v3 = vld [vmem:[%s190_s7] sm:$0xf]  ;;  %s183_s9 = scalar_lea.vmem [#allocation2], %s379_s4  ;;  %s471_s19 = scalar_lea.hbm %s470_s18, 32 }
  0x19   : > { %381 = vmatpush.msk.msra.mxu0 %vm233_vm0, %v195_v3  ;;  %392 = vmatpush.msk.msra.mxu1 %vm233_vm0, %v195_v3  ;;  %s296_s10 = sshll.u32 %s183_s9, 4  ;;  %p472_p12 = scmp.ne.s32.totalorder %s470_s18, %s471_s19  ;;  %s297_s10 = int_to_ptr.vmem [resolvable:$true] %s296_s10 }
  0x1a   : > { %393 = vmatpush.msk.msra.mxu2 %vm233_vm0, %v195_v3  ;;  %394 = vmatpush.msk.msra.mxu3 %vm233_vm0, %v195_v3  ;;  %p476_p1 = scmp.lt.s32.totalorder %s470_s18, %s686_s3  ;;  %p477_p2 = scmp.lt.s32.totalorder %s475_s26, %s471_s19 }
  0x1b   : > { %382 = vmatmul.msk.f32.vlgmr.msra.gmra.mxu0 %vm220_vm1, %v191_v4  ;;  %383 = vmatmul.msk.f32.vlgmr.msra.gmra.mxu1 %vm220_vm1, %v192_v5  ;;  %p473_p13 = pnand %p472_p12, %p598_p4 }
  0x1c   : > { %384 = vmatmul.msk.f32.vlgmr.msra.gmra.mxu2 %vm220_vm1, %v193_v6  ;;  %385 = vmatmul.msk.f32.vlgmr.msra.gmra.mxu3 %vm220_vm1, %v194_v7  ;;  %p478_p3 = por %p477_p2, %p476_p1 }
  0x1d   : > { %p474_p0 = pneg %p473_p13 }
  0x1e   : > { %217 = vperm.xlu1 %454, %v199_v8   ;;  %207 = vperm.xlu0 %453, %v197_v9  }
  0x1f   : > { %p479_p5 = pnand %p478_p3, %p474_p0 }
  0x88   : > { %v203_v10 = vpop.permute.xlu0 %202  ;;  %v213_v11 = vpop.permute.xlu1 %212 }
  0x90   : > { %v208_v12 = vpop.permute.xlu0 %207  ;;  %v218_v21 = vpop.permute.xlu1 %217 }
  0x98   : > { %v254_v13 = vpop.f32.mrf.mxu0  ;;  %v257_v14 = vpop.f32.mrf.mxu1 }
  0x99   : > { %v255_v15 = vadd.f32 %v254_v13, %v203_v10  ;;  %v258_v16 = vadd.f32 %v257_v14, %v208_v12 }
  0x9b   : > { %vm266_vm2 = vcmp.gt.f32.partialorder %v255_v15, 0.0  ;;  %v270_v17 = vmul.f32 0.2, %v255_v15  ;;  %vm267_vm3 = vcmp.gt.f32.partialorder %v258_v16, 0.0  ;;  %v271_v18 = vmul.f32 0.2, %v258_v16 }
  0x9d   : > { %v274_v19 = vsel %vm266_vm2, %v255_v15, %v270_v17  ;;  %v275_v20 = vsel %vm267_vm3, %v258_v16, %v271_v18 }
  0x9e   : > { %278 = vst [vmem:[%s183_s9] sm:$0xff] %v274_v19 }
  0x9f   : > { %279 = vst [vmem:[%s183_s9 + $0x8] sm:$0xff] %v275_v20  ;;  %v260_v22 = vpop.f32.mrf.mxu2  ;;  %v263_v23 = vpop.f32.mrf.mxu3 }
  0xa0   : > { %v261_v24 = vadd.f32 %v260_v22, %v213_v11  ;;  %v264_v25 = vadd.f32 %v263_v23, %v218_v21 }
  0xa2   : > { %vm268_vm4 = vcmp.gt.f32.partialorder %v261_v24, 0.0  ;;  %v272_v26 = vmul.f32 0.2, %v261_v24  ;;  %vm269_vm5 = vcmp.gt.f32.partialorder %v264_v25, 0.0  ;;  %v273_v27 = vmul.f32 0.2, %v264_v25 }
  0xa4   : > { %v276_v28 = vsel %vm268_vm4, %v261_v24, %v272_v26  ;;  %v277_v29 = vsel %vm269_vm5, %v264_v25, %v273_v27 }
  0xa5   : > { %280 = vst [vmem:[%s183_s9 + $0x10] sm:$0xff] %v276_v28 }
  0xa6   : > { %281 = vst [vmem:[%s183_s9 + $0x18] sm:$0xff] %v277_v29 }
  0xa7   : > { %482 = shalt.err (!%p479_p5)
}
  0xa8   : > { %s536_s29 = smov 128   ;;  %s537_s30 = smov 8  }
  0xa9   : > { %395 = dma.vmem_to_hbm [thread:$0]  (%p598_p4), %s297_s10, 512, %s299_s15, %s283_s11, %s536_s29, %s536_s29, %s537_s30  }
  0xaa PF: > { %p401_p6 = scmp.ge.s32.totalorder %s533_s17, 2  ;;  %s313_s4 = sand.u32 1, %s513_s12  }
  0xab   : > { %s314_s5 = scalar_lea.sflag [#allocation3], %s313_s4 }
  0xac   : > { %p398_p7 = pnand %p401_p6, %p605_p8 }
  0xae   : > { %p399_p9 = pneg %p398_p7 }
  0xb0   : > { %508 = dma.done.wait (%p399_p9), %s314_s5, 512  }
  0xb1   : > { %510 = vsyncadd (%p399_p9), %s314_s5, 4294966784  ;;  %s16_s17 = sadd.s32 1, %s533_s17   ;;  %s689_s12 = smov %s517_s13 }
  0xb2   : > { %p13_p10 = scmp.ge.s32.totalorder %s16_s17, 4   ;;  %s690_s13 = smov %s521_s14 }
  0xb3   : > { %s691_s14 = smov %s611_s25  ;;  %s692_s15 = smov %s529_s16 }
  0xb4   : > { %s693_s16 = smov %s695_s20  ;;  %15 = sbr.rel (!%p13_p10) target bundleno = 4 (0x4), region = 67 }
  0xb9   :  { %320 = vsyncpa [#allocation3], 1 }
  0xba   :  { %322 = vsyncpa [#allocation3 + $0x1], 1 }

</bundles_post_ra>
